<compile_context>
chip_gen: v6e
topology: v6e:2x2x1
jax: 0.10.0
libtpu: 0.0.40
codegen_flags: <defaults>
</compile_context>

<pallas_src>
import jax
import jax.numpy as jnp
from jax.experimental import pallas as pl
from jax.experimental.pallas import tpu as pltpu


# ------------------------------ Pallas kernel -------------------------------

def _logreg_features_kernel(x_ref, f_ref, w1_ref, b1_ref,
                            w2x_ref, w2f_ref, b2_ref, o_ref):
    """Fused: sigmoid(cat(sigmoid(x@W1+b1), features) @ W2 + b2)."""
    # First linear + sigmoid, f32 accumulation on the MXU.
    z = jnp.dot(x_ref[...], w1_ref[...],
                preferred_element_type=jnp.float32) + b1_ref[...]
    x_prime = 1.0 / (1.0 + jnp.exp(-z))          # exp runs on the EUP slot

    # Second linear applied to the (implicit) concatenation, + sigmoid.
    z2 = (jnp.dot(x_prime, w2x_ref[...], preferred_element_type=jnp.float32)
          + jnp.dot(f_ref[...], w2f_ref[...], preferred_element_type=jnp.float32)
          + b2_ref[...])
    o_ref[...] = 1.0 / (1.0 + jnp.exp(-z2))


# --------------------------------- wrapper ----------------------------------

def logistic_regression_with_features(x, features, w1, b1, w2, b2):
    """x:(B,input_dim), features:(B,feature_dim), w1:(input_dim,2), b1:(2,),
    w2:(feature_dim+2, output_dim), b2:(output_dim,) -> (B, output_dim)."""
    B, input_dim = x.shape
    feature_dim = features.shape[1]
    output_dim = w2.shape[1]

    # Fold away torch.cat: split W2 into the rows that multiply the sigmoid
    # branch (first 2) and the rows that multiply the raw features.
    w2x = w2[:2, :]
    w2f = w2[2:, :]

    def full(*shape):
        return pl.BlockSpec(shape, lambda i, _s=len(shape): (0,) * _s)

    return pl.pallas_call(
        _logreg_features_kernel,
        out_shape=jax.ShapeDtypeStruct((B, output_dim), jnp.float32),
        grid=(1,),
        in_specs=[full(B, input_dim),
                  full(B, feature_dim),
                  full(input_dim, 2),
                  full(1, 2),
                  full(2, output_dim),
                  full(feature_dim, output_dim),
                  full(1, output_dim)],
        out_specs=full(B, output_dim),
        compiler_params=pltpu.CompilerParams(
            dimension_semantics=("arbitrary",)),
    )(x, features, w1, b1.reshape(1, 2), w2x, w2f,
      b2.reshape(1, output_dim))


# ----------------------------------- main ------------------------------------

if __name__ == "__main__":
    key = jax.random.PRNGKey(0)
    B, input_dim, feature_dim, output_dim = 4, 16, 8, 3
    k1, k2, k3, k4, k5, k6 = jax.random.split(key, 6)

    x = jax.random.normal(k1, (B, input_dim), dtype=jnp.float32)
    features = jax.random.normal(k2, (B, feature_dim), dtype=jnp.float32)
    w1 = (0.1 * jax.random.normal(k3, (input_dim, 2))).astype(jnp.float32)
    b1 = (0.1 * jax.random.normal(k4, (2,))).astype(jnp.float32)
    w2 = (0.1 * jax.random.normal(k5, (feature_dim + 2, output_dim))).astype(jnp.float32)
    b2 = (0.1 * jax.random.normal(k6, (output_dim,))).astype(jnp.float32)

    out = logistic_regression_with_features(x, features, w1, b1, w2, b2)
    out = jax.block_until_ready(out)

    # Plain-JAX reference (mirrors the PyTorch forward exactly).
    x_prime = jax.nn.sigmoid(x @ w1 + b1)
    ref = jax.nn.sigmoid(jnp.concatenate([x_prime, features], axis=1) @ w2 + b2)

    assert out.shape == (B, output_dim)
    assert bool(jnp.all((out >= 0.0) & (out <= 1.0)))
    assert bool(jnp.allclose(out, ref, atol=1e-5, rtol=1e-5))
    print("KERNEL_OK")
</pallas_src>

<mosaic_0001>
module attributes {stable_mosaic.version = 11 : i64} {
  func.func @_logreg_features_kernel(%arg0: i32, %arg1: memref<4x16xf32, #tpu.memory_space<vmem>>, %arg2: memref<4x8xf32, #tpu.memory_space<vmem>>, %arg3: memref<16x2xf32, #tpu.memory_space<vmem>>, %arg4: memref<1x2xf32, #tpu.memory_space<vmem>>, %arg5: memref<2x3xf32, #tpu.memory_space<vmem>>, %arg6: memref<8x3xf32, #tpu.memory_space<vmem>>, %arg7: memref<1x3xf32, #tpu.memory_space<vmem>>, %arg8: memref<4x3xf32, #tpu.memory_space<vmem>>) attributes {dimension_semantics = [#tpu.dimension_semantics<arbitrary>], iteration_bounds = array<i64: 1>, scalar_prefetch = 0 : i64, scratch_operands = 0 : i64, tpu.core_type = #tpu.core_type<tc>, window_params = [{pipeline_mode = #tpu.pipeline_mode<synchronous>, transform_indices = @transform_0, window_bounds = array<i64: 4, 16>}, {pipeline_mode = #tpu.pipeline_mode<synchronous>, transform_indices = @transform_1, window_bounds = array<i64: 4, 8>}, {pipeline_mode = #tpu.pipeline_mode<synchronous>, transform_indices = @transform_2, window_bounds = array<i64: 16, 2>}, {pipeline_mode = #tpu.pipeline_mode<synchronous>, transform_indices = @transform_3, window_bounds = array<i64: 1, 2>}, {pipeline_mode = #tpu.pipeline_mode<synchronous>, transform_indices = @transform_4, window_bounds = array<i64: 2, 3>}, {pipeline_mode = #tpu.pipeline_mode<synchronous>, transform_indices = @transform_5, window_bounds = array<i64: 8, 3>}, {pipeline_mode = #tpu.pipeline_mode<synchronous>, transform_indices = @transform_6, window_bounds = array<i64: 1, 3>}, {pipeline_mode = #tpu.pipeline_mode<synchronous>, transform_indices = @transform_7, window_bounds = array<i64: 4, 3>}]} {
    %c0 = arith.constant 0 : index
    %c0_0 = arith.constant 0 : index
    %0 = vector.load %arg1[%c0, %c0_0] : memref<4x16xf32, #tpu.memory_space<vmem>>, vector<4x16xf32>
    %c0_1 = arith.constant 0 : index
    %c0_2 = arith.constant 0 : index
    %1 = vector.load %arg3[%c0_1, %c0_2] : memref<16x2xf32, #tpu.memory_space<vmem>>, vector<16x2xf32>
    %cst = arith.constant dense<0.000000e+00> : vector<4x2xf32>
    %2 = tpu.matmul %0, %1, %cst {dimension_numbers = #tpu.dot_dimension_numbers<[1], [0], [0], [1], [0, 0, 1, 1], [], []>} : vector<4x16xf32>, vector<16x2xf32>, vector<4x2xf32> -> vector<4x2xf32>
    %c0_3 = arith.constant 0 : index
    %c0_4 = arith.constant 0 : index
    %3 = vector.load %arg4[%c0_3, %c0_4] : memref<1x2xf32, #tpu.memory_space<vmem>>, vector<1x2xf32>
    %4 = vector.broadcast %3 : vector<1x2xf32> to vector<4x2xf32>
    %5 = arith.addf %2, %4 : vector<4x2xf32>
    %cst_5 = arith.constant 0.000000e+00 : f32
    %6 = vector.broadcast %cst_5 : f32 to vector<4x2xf32>
    %7 = arith.subf %6, %5 : vector<4x2xf32>
    %8 = math.exp %7 : vector<4x2xf32>
    %cst_6 = arith.constant 1.000000e+00 : f32
    %9 = vector.broadcast %cst_6 : f32 to vector<4x2xf32>
    %10 = arith.addf %9, %8 : vector<4x2xf32>
    %cst_7 = arith.constant 1.000000e+00 : f32
    %11 = vector.broadcast %cst_7 : f32 to vector<4x2xf32>
    %12 = arith.divf %11, %10 : vector<4x2xf32>
    %c0_8 = arith.constant 0 : index
    %c0_9 = arith.constant 0 : index
    %13 = vector.load %arg5[%c0_8, %c0_9] : memref<2x3xf32, #tpu.memory_space<vmem>>, vector<2x3xf32>
    %cst_10 = arith.constant dense<0.000000e+00> : vector<4x3xf32>
    %14 = tpu.matmul %12, %13, %cst_10 {dimension_numbers = #tpu.dot_dimension_numbers<[1], [0], [0], [1], [0, 0, 1, 1], [], []>} : vector<4x2xf32>, vector<2x3xf32>, vector<4x3xf32> -> vector<4x3xf32>
    %c0_11 = arith.constant 0 : index
    %c0_12 = arith.constant 0 : index
    %15 = vector.load %arg2[%c0_11, %c0_12] : memref<4x8xf32, #tpu.memory_space<vmem>>, vector<4x8xf32>
    %c0_13 = arith.constant 0 : index
    %c0_14 = arith.constant 0 : index
    %16 = vector.load %arg6[%c0_13, %c0_14] : memref<8x3xf32, #tpu.memory_space<vmem>>, vector<8x3xf32>
    %cst_15 = arith.constant dense<0.000000e+00> : vector<4x3xf32>
    %17 = tpu.matmul %15, %16, %cst_15 {dimension_numbers = #tpu.dot_dimension_numbers<[1], [0], [0], [1], [0, 0, 1, 1], [], []>} : vector<4x8xf32>, vector<8x3xf32>, vector<4x3xf32> -> vector<4x3xf32>
    %18 = arith.addf %14, %17 : vector<4x3xf32>
    %c0_16 = arith.constant 0 : index
    %c0_17 = arith.constant 0 : index
    %19 = vector.load %arg7[%c0_16, %c0_17] : memref<1x3xf32, #tpu.memory_space<vmem>>, vector<1x3xf32>
    %20 = vector.broadcast %19 : vector<1x3xf32> to vector<4x3xf32>
    %21 = arith.addf %18, %20 : vector<4x3xf32>
    %cst_18 = arith.constant 0.000000e+00 : f32
    %22 = vector.broadcast %cst_18 : f32 to vector<4x3xf32>
    %23 = arith.subf %22, %21 : vector<4x3xf32>
    %24 = math.exp %23 : vector<4x3xf32>
    %cst_19 = arith.constant 1.000000e+00 : f32
    %25 = vector.broadcast %cst_19 : f32 to vector<4x3xf32>
    %26 = arith.addf %25, %24 : vector<4x3xf32>
    %cst_20 = arith.constant 1.000000e+00 : f32
    %27 = vector.broadcast %cst_20 : f32 to vector<4x3xf32>
    %28 = arith.divf %27, %26 : vector<4x3xf32>
    %c0_21 = arith.constant 0 : index
    %c0_22 = arith.constant 0 : index
    %29 = vector.load %arg8[%c0_21, %c0_22] : memref<4x3xf32, #tpu.memory_space<vmem>>, vector<4x3xf32>
    tpu.vector_store %arg8[%c0_21, %c0_22], %28 {strides = array<i32>} : memref<4x3xf32, #tpu.memory_space<vmem>>, vector<4x3xf32>,
    return
  }
  func.func @transform_0(%arg0: i32) -> (i32, i32) {
    %c0_i32 = arith.constant 0 : i32
    %c0_i32_0 = arith.constant 0 : i32
    %c0_i32_1 = arith.constant 0 : i32
    return %c0_i32, %c0_i32_0 : i32, i32
  }
  func.func @transform_1(%arg0: i32) -> (i32, i32) {
    %c0_i32 = arith.constant 0 : i32
    %c0_i32_0 = arith.constant 0 : i32
    %c0_i32_1 = arith.constant 0 : i32
    return %c0_i32, %c0_i32_0 : i32, i32
  }
  func.func @transform_2(%arg0: i32) -> (i32, i32) {
    %c0_i32 = arith.constant 0 : i32
    %c0_i32_0 = arith.constant 0 : i32
    %c0_i32_1 = arith.constant 0 : i32
    return %c0_i32, %c0_i32_0 : i32, i32
  }
  func.func @transform_3(%arg0: i32) -> (i32, i32) {
    %c0_i32 = arith.constant 0 : i32
    %c0_i32_0 = arith.constant 0 : i32
    %c0_i32_1 = arith.constant 0 : i32
    return %c0_i32, %c0_i32_0 : i32, i32
  }
  func.func @transform_4(%arg0: i32) -> (i32, i32) {
    %c0_i32 = arith.constant 0 : i32
    %c0_i32_0 = arith.constant 0 : i32
    %c0_i32_1 = arith.constant 0 : i32
    return %c0_i32, %c0_i32_0 : i32, i32
  }
  func.func @transform_5(%arg0: i32) -> (i32, i32) {
    %c0_i32 = arith.constant 0 : i32
    %c0_i32_0 = arith.constant 0 : i32
    %c0_i32_1 = arith.constant 0 : i32
    return %c0_i32, %c0_i32_0 : i32, i32
  }
  func.func @transform_6(%arg0: i32) -> (i32, i32) {
    %c0_i32 = arith.constant 0 : i32
    %c0_i32_0 = arith.constant 0 : i32
    %c0_i32_1 = arith.constant 0 : i32
    return %c0_i32, %c0_i32_0 : i32, i32
  }
  func.func @transform_7(%arg0: i32) -> (i32, i32) {
    %c0_i32 = arith.constant 0 : i32
    %c0_i32_0 = arith.constant 0 : i32
    %c0_i32_1 = arith.constant 0 : i32
    return %c0_i32, %c0_i32_0 : i32, i32
  }
}

</mosaic_0001>

<bundles_post_ra>
// kernel: tpu_custom_call.1
= control target key start
LH: loop header
LB: loop body
LE: loop exit
PB: predicated region body
PF: predicated region fallthrough
CT: control target
= control target key end

     0   :  { %v365_v1 = vmov 0.0   ;;  %vm366_vm0 = vmmov 0   ;;  %s438_s0 = inlined_call_operand.vmem [shape: f32[4,16], index: 0, kind: input, shape index: {}]   ;;  %s439_s1 = inlined_call_operand.vmem [shape: f32[4,8], index: 1, kind: input, shape index: {}]   ;;  %s440_s2 = inlined_call_operand.vmem [shape: f32[16,2], index: 2, kind: input, shape index: {}]   ;;  %s441_s3 = inlined_call_operand.vmem [shape: f32[1,2], index: 3, kind: input, shape index: {}]   ;;  %s442_s4 = inlined_call_operand.vmem [shape: f32[2,3], index: 4, kind: input, shape index: {}]   ;;  %s443_s5 = inlined_call_operand.vmem [shape: f32[8,3], index: 5, kind: input, shape index: {}]   ;;  %s444_s6 = inlined_call_operand.vmem [shape: f32[1,3], index: 6, kind: input, shape index: {}]   ;;  %s445_s7 = inlined_call_operand.hbm [shape: f32[4,3], index: 7, kind: output, shape index: {}]  }
   0x1   :  { %v29_v0 = vld [vmem:[%s440_s2 + $0x8] sm:$0xff]  ;;  %315 = vmatprep.subr.mxu0 %v365_v1  ;;  %v28_v2 = vld [vmem:[%s440_s2] sm:$0xff]  ;;  %319 = vmatprep.mubr.msk.f32.mxu0 %vm366_vm0, %v365_v1 }
   0x2   :  { %12 = vsyncpa [#allocation3], 0  ;;  %316 = vmatpush3.msra.mxu0 %v29_v0  ;;  %v27_v3 = vld [vmem:[%s438_s0] sm:$0xf]  ;;  %vm37_vm1 = vcmask 130048   ;;  %322 = vmatprep.subr.mxu1 %v365_v1  ;;  %vm120_vm2 = vcmask 64512  }
   0x3   :  { %317 = vmatprep.subr.mxu0 %v365_v1  ;;  %324 = vmatprep.mubr.msk.f32.mxu1 %vm366_vm0, %v365_v1  ;;  %v119_v4 = vld [vmem:[%s443_s5] sm:$0xff]  ;;  %vm198_vm3 = vcmask 1041408   ;;  %vm194_vm4 = vcmask 15360   ;;  %vm286_vm5 = vcmask 19456  }
   0x4   :  { %318 = vmatpush3.msra.mxu0 %v28_v2  ;;  %v118_v5 = vld [vmem:[%s439_s1] sm:$0xf]  ;;  %323 = vmatpush3.msra.mxu1 %v119_v4 }
   0x5   :  { %320 = vmatmul.mubr.msk.f32.vlgmr.msra.gmra.mxu0 %vm37_vm1, %v27_v3  ;;  %v117_v6 = vld [vmem:[%s442_s4] sm:$0x3]  ;;  %325 = vmatmul.mubr.msk.f32.vlgmr.msra.gmra.mxu1 %vm120_vm2, %v118_v5 }
   0x6   :  { %327 = vmatprep.subr.mxu1 %v365_v1  ;;  %329 = vmatprep.mubr.msk.f32.mxu1 %vm366_vm0, %v365_v1  ;;  %v302_v7 = vld [vmem:[%s441_s3] ss:$0 sm:$0xff]  ;;  %s367_s3 = smov [#allocation2]  }
   0x7   :  { %328 = vmatpush3.msk.msra.mxu1 %vm198_vm3, %v117_v6  ;;  %v307_v19 = vld [vmem:[%s444_s6] ss:$0 sm:$0xff]  ;;  %s294_s5 = sshll.u32 %s367_s3, 4  ;;  %s295_s5 = int_to_ptr.vmem [resolvable:$true] %s294_s5 }
   0x8   :  { %s343_s13 = scalar_lea.vmem %s295_s5, 64  ;;  %p348_p1 = scmp.lt.s32.totalorder %s295_s5, %s295_s5 }
   0x9   :  { %p344_p0 = scmp.ne.s32.totalorder %s295_s5, %s343_s13  ;;  %p349_p2 = scmp.lt.s32.totalorder %s343_s13, %s343_s13 }
   0xb   :  { %p350_p3 = por %p349_p2, %p348_p1 }
   0xd   :  { %p351_p4 = pnand %p350_p3, %p344_p0 }
  0xc5   :  { %v107_v8 = vpop.f32.mrf.mxu0  ;;  %v190_v16 = vpop.f32.mrf.mxu1 }
  0xc6   :  { %v108_v9 = vadd.f32 %v302_v7, %v107_v8 }
  0xc7   :  { %v321_v10 = vpop.f32.mrf.mxu0  ;;  %v326_v17 = vpop.f32.mrf.mxu1 }
  0xc8   :  { %v111_v11 = vsub.f32 0.0, %v108_v9 }
  0xca   :  { %v112_v12 = vmul.f32 1.442695, %v111_v11 }
  0xcc   :  { %335 = vpow2.f32 %v112_v12 }
  0xd9   :  { %v336_v13 = vpop.eup %335 }
  0xda   :  { %v114_v14 = vadd.f32 1.0, %v336_v13 }
  0xdc   :  { %337 = vrcp.f32 %v114_v14 }
  0xe9   :  { %v338_v15 = vpop.eup %337 }
  0xea   :  { %330 = vmatmul.mubr.msk.f32.vlgmr.msra.gmra.mxu1 %vm194_vm4, %v338_v15 }
 0x1aa   :  { %v268_v18 = vpop.f32.mrf.mxu1 }
 0x1ab   :  { %v269_v20 = vadd.f32 %v268_v18, %v190_v16 }
 0x1ac   :  { %v331_v21 = vpop.f32.mrf.mxu1 }
 0x1ad   :  { %v279_v22 = vadd.f32 %v307_v19, %v269_v20 }
 0x1af   :  { %v280_v23 = vsub.f32 0.0, %v279_v22 }
 0x1b1   :  { %v281_v24 = vmul.f32 1.442695, %v280_v23 }
 0x1b3   :  { %339 = vpow2.f32 %v281_v24 }
 0x1c0   :  { %v340_v25 = vpop.eup %339 }
 0x1c1   :  { %v283_v26 = vadd.f32 1.0, %v340_v25 }
 0x1c3   :  { %341 = vrcp.f32 %v283_v26 }
 0x1d0   :  { %v342_v27 = vpop.eup %341 }
 0x1d1   :  { %287 = vst.msk [vmem:[#allocation2] sm:$0xf] %vm286_vm5, %v342_v27 }
 0x1d2   :  { %354 = shalt.err (!%p351_p4)
}
 0x1d3   :  { %297 = dma.vmem_to_hbm [thread:$0]  %s295_s5, 64, %s445_s7, [#allocation3]  }
 0x1d4   :  { %363 = dma.done.wait [#allocation3], 64  }
 0x1d5   :  { %364 = vsyncadd [#allocation3], 4294967232 }
 0x1d6   :  { %301 = vsyncpa [#allocation3], 1 }

</bundles_post_ra>
